<compile_context>
chip_gen: v5e
topology: v5e:2x2
jax: 0.10.0
libtpu: 0.0.40
codegen_flags: <defaults>
</compile_context>

<pallas_src>
import jax
import jax.numpy as jnp
from jax import lax
from jax.experimental import pallas as pl
from jax.experimental.pallas import tpu as pltpu
import numpy as np

# ---- model sizes (small, consistent with the module's forward) ----
SEQ = 8          # sentence length
N_IN = 32        # embedding dim (nIn)
N_HID = 32       # LSTM hidden size (nHidden); 4*N_HID == 128 == one vreg lane dim
VOCAB = 64       # vocabulary size
VOCAB_PAD = 128  # lane-dense padded vocab for the output projection


def lstm_lm_kernel(tok_ref, emb_tbl_ref, wih_ref, whh_ref, b_ref,
                   wlin_ref, blin_ref, out_ref, xproj_sc, rec_sc):
    """Embedding gather + full LSTM recurrence + output projection.

    tok_ref    : (SEQ, 1)          token ids (int32, VMEM)
    emb_tbl_ref: (VOCAB, N_IN)     embedding table
    wih_ref    : (N_IN, 4*N_HID)   input->gates weights (transposed, order i,f,g,o)
    whh_ref    : (N_HID, 4*N_HID)  hidden->gates weights (transposed)
    b_ref      : (1, 4*N_HID)      combined bias (b_ih + b_hh)
    wlin_ref   : (N_HID, VOCAB_PAD) output linear weight (transposed, zero-padded)
    blin_ref   : (1, VOCAB_PAD)    output linear bias (zero-padded)
    out_ref    : (SEQ, VOCAB_PAD)  logits (padded lanes are bias-only zeros)
    xproj_sc   : (SEQ, 4*N_HID)    scratch: x@Wih + b
    rec_sc     : (SEQ, N_HID)      scratch: recurrent hidden outputs
    """
    H = rec_sc.shape[1]
    seq = rec_sc.shape[0]
    vocab = emb_tbl_ref.shape[0]

    # Embedding lookup as a one-hot matmul on the MXU (exact in f32, no
    # dynamic indexing / gather lowering needed):
    lane_ids = lax.broadcasted_iota(jnp.int32, (seq, vocab), 1)       # (SEQ, VOCAB)
    onehot = (lane_ids == tok_ref[...]).astype(jnp.float32)           # (SEQ, VOCAB)
    emb = jnp.dot(onehot, emb_tbl_ref[...],
                  preferred_element_type=jnp.float32)                 # (SEQ, N_IN)

    # Hoist the input projection (and bias) out of the serial recurrence:
    # one batched (SEQ, N_IN) @ (N_IN, 4H) matmul, off the critical path.
    xproj_sc[...] = (jnp.dot(emb, wih_ref[...],
                             preferred_element_type=jnp.float32)
                     + b_ref[...])

    # Recurrent weights loaded once; stay resident in vregs.
    whh = whh_ref[...]                                                # (N_HID, 4H)

    def step(t, carry):
        h, c = carry                                                  # (1, H) vreg-resident
        gates = (xproj_sc[pl.ds(t, 1), :]
                 + jnp.dot(h, whh,
                           preferred_element_type=jnp.float32))       # (1, 4H)
        # Full-vreg transcendentals (EUP slot); slice the results per gate.
        sg = jax.nn.sigmoid(gates)
        tg = jnp.tanh(gates)
        i_g = sg[:, 0 * H:1 * H]
        f_g = sg[:, 1 * H:2 * H]
        g_g = tg[:, 2 * H:3 * H]
        o_g = sg[:, 3 * H:4 * H]
        c_new = f_g * c + i_g * g_g
        h_new = o_g * jnp.tanh(c_new)
        rec_sc[pl.ds(t, 1), :] = h_new
        return h_new, c_new

    h0 = jnp.zeros((1, H), jnp.float32)
    c0 = jnp.zeros((1, H), jnp.float32)
    # SEQ is a compile-time constant: fully unroll so the LLO scheduler can
    # overlap step t's elementwise tail with step t+1's MXU push.
    lax.fori_loop(0, seq, step, (h0, c0), unroll=True)

    # Output linear over all timesteps: (SEQ, H) @ (H, VOCAB_PAD) + bias
    # (lane-dense: VOCAB padded to 128 -> unmasked stores).
    out_ref[...] = (jnp.dot(rec_sc[...], wlin_ref[...],
                            preferred_element_type=jnp.float32)
                    + blin_ref[...])


@jax.jit
def lstm_lm_forward(sentence, params):
    """Equivalent of LSTM_lm.forward(sentence) -> (seq*1, vocab) logits."""
    tokens = sentence.reshape(SEQ, 1).astype(jnp.int32)           # (SEQ, 1)

    wih_t = params["w_ih"].T                                      # (N_IN, 4H)
    whh_t = params["w_hh"].T                                      # (N_HID, 4H)
    bias = (params["b_ih"] + params["b_hh"]).reshape(1, -1)       # (1, 4H)
    # Lane-dense output projection: pad vocab dim 64 -> 128 with zeros.
    wlin_t = jnp.pad(params["w_lin"].T,
                     ((0, 0), (0, VOCAB_PAD - VOCAB)))            # (N_HID, VOCAB_PAD)
    blin = jnp.pad(params["b_lin"],
                   (0, VOCAB_PAD - VOCAB)).reshape(1, -1)         # (1, VOCAB_PAD)

    out = pl.pallas_call(
        lstm_lm_kernel,
        out_shape=jax.ShapeDtypeStruct((SEQ, VOCAB_PAD), jnp.float32),
        # No grid: whole problem fits comfortably in VMEM (~100 KiB total).
        scratch_shapes=[
            pltpu.VMEM((SEQ, 4 * N_HID), jnp.float32),  # xproj = x@Wih + b
            pltpu.VMEM((SEQ, N_HID), jnp.float32),      # recurrent outputs
        ],
    )(tokens, params["embedding"], wih_t, whh_t, bias, wlin_t, blin)
    return out[:, :VOCAB]


def lstm_lm_reference(sentence, params):
    """Pure-JAX reference matching torch.nn.LSTM / Linear semantics."""
    emb = params["embedding"][sentence]
    H = N_HID
    b = params["b_ih"] + params["b_hh"]

    def step(carry, x_t):
        h, c = carry
        gates = x_t @ params["w_ih"].T + h @ params["w_hh"].T + b
        i_g = jax.nn.sigmoid(gates[0 * H:1 * H])
        f_g = jax.nn.sigmoid(gates[1 * H:2 * H])
        g_g = jnp.tanh(gates[2 * H:3 * H])
        o_g = jax.nn.sigmoid(gates[3 * H:4 * H])
        c_new = f_g * c + i_g * g_g
        h_new = o_g * jnp.tanh(c_new)
        return (h_new, c_new), h_new

    init = (jnp.zeros((H,), jnp.float32), jnp.zeros((H,), jnp.float32))
    _, rec = lax.scan(step, init, emb)
    return rec @ params["w_lin"].T + params["b_lin"]


def init_params(key):
    ks = jax.random.split(key, 7)
    scale = 1.0 / np.sqrt(N_HID)
    u = lambda k, shape: jax.random.uniform(k, shape, jnp.float32, -scale, scale)
    return {
        "embedding": jax.random.normal(ks[0], (VOCAB, N_IN), jnp.float32),
        "w_ih": u(ks[1], (4 * N_HID, N_IN)),
        "w_hh": u(ks[2], (4 * N_HID, N_HID)),
        "b_ih": u(ks[3], (4 * N_HID,)),
        "b_hh": u(ks[4], (4 * N_HID,)),
        "w_lin": u(ks[5], (VOCAB, N_HID)),
        "b_lin": u(ks[6], (VOCAB,)),
    }


if __name__ == "__main__":
    key = jax.random.PRNGKey(0)
    k_params, k_sent = jax.random.split(key)
    params = init_params(k_params)
    sentence = jax.random.randint(k_sent, (SEQ,), 0, VOCAB, dtype=jnp.int32)

    out = lstm_lm_forward(sentence, params)
    out = jax.block_until_ready(out)

    ref = lstm_lm_reference(sentence, params)
    np.testing.assert_allclose(np.asarray(out), np.asarray(ref),
                               rtol=1e-3, atol=1e-3)
    assert out.shape == (SEQ, VOCAB)
    print("KERNEL_OK")
</pallas_src>

<mosaic_0001>
module attributes {stable_mosaic.version = 11 : i64} {
  func.func @lstm_lm_kernel(%arg0: memref<8x1xi32, #tpu.memory_space<vmem>>, %arg1: memref<64x32xf32, #tpu.memory_space<vmem>>, %arg2: memref<32x128xf32, #tpu.memory_space<vmem>>, %arg3: memref<32x128xf32, #tpu.memory_space<vmem>>, %arg4: memref<1x128xf32, #tpu.memory_space<vmem>>, %arg5: memref<32x128xf32, #tpu.memory_space<vmem>>, %arg6: memref<1x128xf32, #tpu.memory_space<vmem>>, %arg7: memref<8x128xf32, #tpu.memory_space<vmem>>, %arg8: memref<8x128xf32, #tpu.memory_space<vmem>>, %arg9: memref<8x32xf32, #tpu.memory_space<vmem>>) attributes {dimension_semantics = [], scalar_prefetch = 0 : i64, scratch_operands = 2 : i64, tpu.core_type = #tpu.core_type<tc>} {
    %0 = tpu.iota {dimensions = array<i32: 1>} : vector<8x64xi32>
    %c0 = arith.constant 0 : index
    %c0_0 = arith.constant 0 : index
    %1 = vector.load %arg0[%c0, %c0_0] : memref<8x1xi32, #tpu.memory_space<vmem>>, vector<8x1xi32>
    %2 = vector.broadcast %1 : vector<8x1xi32> to vector<8x64xi32>
    %3 = arith.cmpi eq, %0, %2 : vector<8x64xi32>
    %4 = arith.extui %3 : vector<8x64xi1> to vector<8x64xi32>
    %5 = arith.sitofp %4 : vector<8x64xi32> to vector<8x64xf32>
    %c0_1 = arith.constant 0 : index
    %c0_2 = arith.constant 0 : index
    %6 = vector.load %arg1[%c0_1, %c0_2] : memref<64x32xf32, #tpu.memory_space<vmem>>, vector<64x32xf32>
    %cst = arith.constant dense<0.000000e+00> : vector<8x32xf32>
    %7 = tpu.matmul %5, %6, %cst {dimension_numbers = #tpu.dot_dimension_numbers<[1], [0], [0], [1], [0, 0, 1, 1], [], []>} : vector<8x64xf32>, vector<64x32xf32>, vector<8x32xf32> -> vector<8x32xf32>
    %c0_3 = arith.constant 0 : index
    %c0_4 = arith.constant 0 : index
    %8 = vector.load %arg2[%c0_3, %c0_4] : memref<32x128xf32, #tpu.memory_space<vmem>>, vector<32x128xf32>
    %cst_5 = arith.constant dense<0.000000e+00> : vector<8x128xf32>
    %9 = tpu.matmul %7, %8, %cst_5 {dimension_numbers = #tpu.dot_dimension_numbers<[1], [0], [0], [1], [0, 0, 1, 1], [], []>} : vector<8x32xf32>, vector<32x128xf32>, vector<8x128xf32> -> vector<8x128xf32>
    %c0_6 = arith.constant 0 : index
    %c0_7 = arith.constant 0 : index
    %10 = vector.load %arg4[%c0_6, %c0_7] : memref<1x128xf32, #tpu.memory_space<vmem>>, vector<1x128xf32>
    %11 = vector.broadcast %10 : vector<1x128xf32> to vector<8x128xf32>
    %12 = arith.addf %9, %11 : vector<8x128xf32>
    %c0_8 = arith.constant 0 : index
    %c0_9 = arith.constant 0 : index
    %13 = vector.load %arg8[%c0_8, %c0_9] : memref<8x128xf32, #tpu.memory_space<vmem>>, vector<8x128xf32>
    tpu.vector_store %arg8[%c0_8, %c0_9], %12 {strides = array<i32>} : memref<8x128xf32, #tpu.memory_space<vmem>>, vector<8x128xf32>,
    %c0_10 = arith.constant 0 : index
    %c0_11 = arith.constant 0 : index
    %14 = vector.load %arg3[%c0_10, %c0_11] : memref<32x128xf32, #tpu.memory_space<vmem>>, vector<32x128xf32>
    %cst_12 = arith.constant 0.000000e+00 : f32
    %15 = vector.broadcast %cst_12 : f32 to vector<1x32xf32>
    %cst_13 = arith.constant 0.000000e+00 : f32
    %16 = vector.broadcast %cst_13 : f32 to vector<1x32xf32>
    %c0_i32 = arith.constant 0 : i32
    %17 = arith.index_cast %c0_i32 : i32 to index
    %c0_14 = arith.constant 0 : index
    %18 = vector.load %arg8[%17, %c0_14] : memref<8x128xf32, #tpu.memory_space<vmem>>, vector<1x128xf32>
    %cst_15 = arith.constant dense<0.000000e+00> : vector<1x128xf32>
    %19 = tpu.matmul %15, %14, %cst_15 {dimension_numbers = #tpu.dot_dimension_numbers<[1], [0], [0], [1], [0, 0, 1, 1], [], []>} : vector<1x32xf32>, vector<32x128xf32>, vector<1x128xf32> -> vector<1x128xf32>
    %20 = arith.addf %18, %19 : vector<1x128xf32>
    %21 = arith.negf %20 : vector<1x128xf32>
    %22 = math.exp %21 : vector<1x128xf32>
    %cst_16 = arith.constant 1.000000e+00 : f32
    %23 = vector.broadcast %cst_16 : f32 to vector<1x128xf32>
    %24 = arith.addf %23, %22 : vector<1x128xf32>
    %25 = arith.divf %23, %24 : vector<1x128xf32>
    %26 = math.tanh %20 : vector<1x128xf32>
    %27 = vector.extract_strided_slice %25 {offsets = [0, 0], sizes = [1, 32], strides = [1, 1]} : vector<1x128xf32> to vector<1x32xf32>
    %28 = vector.extract_strided_slice %25 {offsets = [0, 32], sizes = [1, 32], strides = [1, 1]} : vector<1x128xf32> to vector<1x32xf32>
    %29 = vector.extract_strided_slice %26 {offsets = [0, 64], sizes = [1, 32], strides = [1, 1]} : vector<1x128xf32> to vector<1x32xf32>
    %30 = vector.extract_strided_slice %25 {offsets = [0, 96], sizes = [1, 32], strides = [1, 1]} : vector<1x128xf32> to vector<1x32xf32>
    %31 = arith.mulf %28, %16 : vector<1x32xf32>
    %32 = arith.mulf %27, %29 : vector<1x32xf32>
    %33 = arith.addf %31, %32 : vector<1x32xf32>
    %34 = math.tanh %33 : vector<1x32xf32>
    %35 = arith.mulf %30, %34 : vector<1x32xf32>
    %36 = arith.index_cast %c0_i32 : i32 to index
    %c0_17 = arith.constant 0 : index
    %37 = vector.load %arg9[%36, %c0_17] : memref<8x32xf32, #tpu.memory_space<vmem>>, vector<1x32xf32>
    tpu.vector_store %arg9[%36, %c0_17], %35 {strides = array<i32>} : memref<8x32xf32, #tpu.memory_space<vmem>>, vector<1x32xf32>,
    %c1_i32 = arith.constant 1 : i32
    %38 = arith.index_cast %c1_i32 : i32 to index
    %c0_18 = arith.constant 0 : index
    %39 = vector.load %arg8[%38, %c0_18] : memref<8x128xf32, #tpu.memory_space<vmem>>, vector<1x128xf32>
    %cst_19 = arith.constant dense<0.000000e+00> : vector<1x128xf32>
    %40 = tpu.matmul %35, %14, %cst_19 {dimension_numbers = #tpu.dot_dimension_numbers<[1], [0], [0], [1], [0, 0, 1, 1], [], []>} : vector<1x32xf32>, vector<32x128xf32>, vector<1x128xf32> -> vector<1x128xf32>
    %41 = arith.addf %39, %40 : vector<1x128xf32>
    %42 = arith.negf %41 : vector<1x128xf32>
    %43 = math.exp %42 : vector<1x128xf32>
    %cst_20 = arith.constant 1.000000e+00 : f32
    %44 = vector.broadcast %cst_20 : f32 to vector<1x128xf32>
    %45 = arith.addf %44, %43 : vector<1x128xf32>
    %46 = arith.divf %44, %45 : vector<1x128xf32>
    %47 = math.tanh %41 : vector<1x128xf32>
    %48 = vector.extract_strided_slice %46 {offsets = [0, 0], sizes = [1, 32], strides = [1, 1]} : vector<1x128xf32> to vector<1x32xf32>
    %49 = vector.extract_strided_slice %46 {offsets = [0, 32], sizes = [1, 32], strides = [1, 1]} : vector<1x128xf32> to vector<1x32xf32>
    %50 = vector.extract_strided_slice %47 {offsets = [0, 64], sizes = [1, 32], strides = [1, 1]} : vector<1x128xf32> to vector<1x32xf32>
    %51 = vector.extract_strided_slice %46 {offsets = [0, 96], sizes = [1, 32], strides = [1, 1]} : vector<1x128xf32> to vector<1x32xf32>
    %52 = arith.mulf %49, %33 : vector<1x32xf32>
    %53 = arith.mulf %48, %50 : vector<1x32xf32>
    %54 = arith.addf %52, %53 : vector<1x32xf32>
    %55 = math.tanh %54 : vector<1x32xf32>
    %56 = arith.mulf %51, %55 : vector<1x32xf32>
    %57 = arith.index_cast %c1_i32 : i32 to index
    %c0_21 = arith.constant 0 : index
    %58 = vector.load %arg9[%57, %c0_21] : memref<8x32xf32, #tpu.memory_space<vmem>>, vector<1x32xf32>
    tpu.vector_store %arg9[%57, %c0_21], %56 {strides = array<i32>} : memref<8x32xf32, #tpu.memory_space<vmem>>, vector<1x32xf32>,
    %c2_i32 = arith.constant 2 : i32
    %59 = arith.index_cast %c2_i32 : i32 to index
    %c0_22 = arith.constant 0 : index
    %60 = vector.load %arg8[%59, %c0_22] : memref<8x128xf32, #tpu.memory_space<vmem>>, vector<1x128xf32>
    %cst_23 = arith.constant dense<0.000000e+00> : vector<1x128xf32>
    %61 = tpu.matmul %56, %14, %cst_23 {dimension_numbers = #tpu.dot_dimension_numbers<[1], [0], [0], [1], [0, 0, 1, 1], [], []>} : vector<1x32xf32>, vector<32x128xf32>, vector<1x128xf32> -> vector<1x128xf32>
    %62 = arith.addf %60, %61 : vector<1x128xf32>
    %63 = arith.negf %62 : vector<1x128xf32>
    %64 = math.exp %63 : vector<1x128xf32>
    %cst_24 = arith.constant 1.000000e+00 : f32
    %65 = vector.broadcast %cst_24 : f32 to vector<1x128xf32>
    %66 = arith.addf %65, %64 : vector<1x128xf32>
    %67 = arith.divf %65, %66 : vector<1x128xf32>
    %68 = math.tanh %62 : vector<1x128xf32>
    %69 = vector.extract_strided_slice %67 {offsets = [0, 0], sizes = [1, 32], strides = [1, 1]} : vector<1x128xf32> to vector<1x32xf32>
    %70 = vector.extract_strided_slice %67 {offsets = [0, 32], sizes = [1, 32], strides = [1, 1]} : vector<1x128xf32> to vector<1x32xf32>
    %71 = vector.extract_strided_slice %68 {offsets = [0, 64], sizes = [1, 32], strides = [1, 1]} : vector<1x128xf32> to vector<1x32xf32>
    %72 = vector.extract_strided_slice %67 {offsets = [0, 96], sizes = [1, 32], strides = [1, 1]} : vector<1x128xf32> to vector<1x32xf32>
    %73 = arith.mulf %70, %54 : vector<1x32xf32>
    %74 = arith.mulf %69, %71 : vector<1x32xf32>
    %75 = arith.addf %73, %74 : vector<1x32xf32>
    %76 = math.tanh %75 : vector<1x32xf32>
    %77 = arith.mulf %72, %76 : vector<1x32xf32>
    %78 = arith.index_cast %c2_i32 : i32 to index
    %c0_25 = arith.constant 0 : index
    %79 = vector.load %arg9[%78, %c0_25] : memref<8x32xf32, #tpu.memory_space<vmem>>, vector<1x32xf32>
    tpu.vector_store %arg9[%78, %c0_25], %77 {strides = array<i32>} : memref<8x32xf32, #tpu.memory_space<vmem>>, vector<1x32xf32>,
    %c3_i32 = arith.constant 3 : i32
    %80 = arith.index_cast %c3_i32 : i32 to index
    %c0_26 = arith.constant 0 : index
    %81 = vector.load %arg8[%80, %c0_26] : memref<8x128xf32, #tpu.memory_space<vmem>>, vector<1x128xf32>
    %cst_27 = arith.constant dense<0.000000e+00> : vector<1x128xf32>
    %82 = tpu.matmul %77, %14, %cst_27 {dimension_numbers = #tpu.dot_dimension_numbers<[1], [0], [0], [1], [0, 0, 1, 1], [], []>} : vector<1x32xf32>, vector<32x128xf32>, vector<1x128xf32> -> vector<1x128xf32>
    %83 = arith.addf %81, %82 : vector<1x128xf32>
    %84 = arith.negf %83 : vector<1x128xf32>
    %85 = math.exp %84 : vector<1x128xf32>
    %cst_28 = arith.constant 1.000000e+00 : f32
    %86 = vector.broadcast %cst_28 : f32 to vector<1x128xf32>
    %87 = arith.addf %86, %85 : vector<1x128xf32>
    %88 = arith.divf %86, %87 : vector<1x128xf32>
    %89 = math.tanh %83 : vector<1x128xf32>
    %90 = vector.extract_strided_slice %88 {offsets = [0, 0], sizes = [1, 32], strides = [1, 1]} : vector<1x128xf32> to vector<1x32xf32>
    %91 = vector.extract_strided_slice %88 {offsets = [0, 32], sizes = [1, 32], strides = [1, 1]} : vector<1x128xf32> to vector<1x32xf32>
    %92 = vector.extract_strided_slice %89 {offsets = [0, 64], sizes = [1, 32], strides = [1, 1]} : vector<1x128xf32> to vector<1x32xf32>
    %93 = vector.extract_strided_slice %88 {offsets = [0, 96], sizes = [1, 32], strides = [1, 1]} : vector<1x128xf32> to vector<1x32xf32>
    %94 = arith.mulf %91, %75 : vector<1x32xf32>
    %95 = arith.mulf %90, %92 : vector<1x32xf32>
    %96 = arith.addf %94, %95 : vector<1x32xf32>
    %97 = math.tanh %96 : vector<1x32xf32>
    %98 = arith.mulf %93, %97 : vector<1x32xf32>
    %99 = arith.index_cast %c3_i32 : i32 to index
    %c0_29 = arith.constant 0 : index
    %100 = vector.load %arg9[%99, %c0_29] : memref<8x32xf32, #tpu.memory_space<vmem>>, vector<1x32xf32>
    tpu.vector_store %arg9[%99, %c0_29], %98 {strides = array<i32>} : memref<8x32xf32, #tpu.memory_space<vmem>>, vector<1x32xf32>,
    %c4_i32 = arith.constant 4 : i32
    %101 = arith.index_cast %c4_i32 : i32 to index
    %c0_30 = arith.constant 0 : index
    %102 = vector.load %arg8[%101, %c0_30] : memref<8x128xf32, #tpu.memory_space<vmem>>, vector<1x128xf32>
    %cst_31 = arith.constant dense<0.000000e+00> : vector<1x128xf32>
    %103 = tpu.matmul %98, %14, %cst_31 {dimension_numbers = #tpu.dot_dimension_numbers<[1], [0], [0], [1], [0, 0, 1, 1], [], []>} : vector<1x32xf32>, vector<32x128xf32>, vector<1x128xf32> -> vector<1x128xf32>
    %104 = arith.addf %102, %103 : vector<1x128xf32>
    %105 = arith.negf %104 : vector<1x128xf32>
    %106 = math.exp %105 : vector<1x128xf32>
    %cst_32 = arith.constant 1.000000e+00 : f32
    %107 = vector.broadcast %cst_32 : f32 to vector<1x128xf32>
    %108 = arith.addf %107, %106 : vector<1x128xf32>
    %109 = arith.divf %107, %108 : vector<1x128xf32>
    %110 = math.tanh %104 : vector<1x128xf32>
    %111 = vector.extract_strided_slice %109 {offsets = [0, 0], sizes = [1, 32], strides = [1, 1]} : vector<1x128xf32> to vector<1x32xf32>
    %112 = vector.extract_strided_slice %109 {offsets = [0, 32], sizes = [1, 32], strides = [1, 1]} : vector<1x128xf32> to vector<1x32xf32>
    %113 = vector.extract_strided_slice %110 {offsets = [0, 64], sizes = [1, 32], strides = [1, 1]} : vector<1x128xf32> to vector<1x32xf32>
    %114 = vector.extract_strided_slice %109 {offsets = [0, 96], sizes = [1, 32], strides = [1, 1]} : vector<1x128xf32> to vector<1x32xf32>
    %115 = arith.mulf %112, %96 : vector<1x32xf32>
    %116 = arith.mulf %111, %113 : vector<1x32xf32>
    %117 = arith.addf %115, %116 : vector<1x32xf32>
    %118 = math.tanh %117 : vector<1x32xf32>
    %119 = arith.mulf %114, %118 : vector<1x32xf32>
    %120 = arith.index_cast %c4_i32 : i32 to index
    %c0_33 = arith.constant 0 : index
    %121 = vector.load %arg9[%120, %c0_33] : memref<8x32xf32, #tpu.memory_space<vmem>>, vector<1x32xf32>
    tpu.vector_store %arg9[%120, %c0_33], %119 {strides = array<i32>} : memref<8x32xf32, #tpu.memory_space<vmem>>, vector<1x32xf32>,
    %c5_i32 = arith.constant 5 : i32
    %122 = arith.index_cast %c5_i32 : i32 to index
    %c0_34 = arith.constant 0 : index
    %123 = vector.load %arg8[%122, %c0_34] : memref<8x128xf32, #tpu.memory_space<vmem>>, vector<1x128xf32>
    %cst_35 = arith.constant dense<0.000000e+00> : vector<1x128xf32>
    %124 = tpu.matmul %119, %14, %cst_35 {dimension_numbers = #tpu.dot_dimension_numbers<[1], [0], [0], [1], [0, 0, 1, 1], [], []>} : vector<1x32xf32>, vector<32x128xf32>, vector<1x128xf32> -> vector<1x128xf32>
    %125 = arith.addf %123, %124 : vector<1x128xf32>
    %126 = arith.negf %125 : vector<1x128xf32>
    %127 = math.exp %126 : vector<1x128xf32>
    %cst_36 = arith.constant 1.000000e+00 : f32
    %128 = vector.broadcast %cst_36 : f32 to vector<1x128xf32>
    %129 = arith.addf %128, %127 : vector<1x128xf32>
    %130 = arith.divf %128, %129 : vector<1x128xf32>
    %131 = math.tanh %125 : vector<1x128xf32>
    %132 = vector.extract_strided_slice %130 {offsets = [0, 0], sizes = [1, 32], strides = [1, 1]} : vector<1x128xf32> to vector<1x32xf32>
    %133 = vector.extract_strided_slice %130 {offsets = [0, 32], sizes = [1, 32], strides = [1, 1]} : vector<1x128xf32> to vector<1x32xf32>
    %134 = vector.extract_strided_slice %131 {offsets = [0, 64], sizes = [1, 32], strides = [1, 1]} : vector<1x128xf32> to vector<1x32xf32>
    %135 = vector.extract_strided_slice %130 {offsets = [0, 96], sizes = [1, 32], strides = [1, 1]} : vector<1x128xf32> to vector<1x32xf32>
    %136 = arith.mulf %133, %117 : vector<1x32xf32>
    %137 = arith.mulf %132, %134 : vector<1x32xf32>
    %138 = arith.addf %136, %137 : vector<1x32xf32>
    %139 = math.tanh %138 : vector<1x32xf32>
    %140 = arith.mulf %135, %139 : vector<1x32xf32>
    %141 = arith.index_cast %c5_i32 : i32 to index
    %c0_37 = arith.constant 0 : index
    %142 = vector.load %arg9[%141, %c0_37] : memref<8x32xf32, #tpu.memory_space<vmem>>, vector<1x32xf32>
    tpu.vector_store %arg9[%141, %c0_37], %140 {strides = array<i32>} : memref<8x32xf32, #tpu.memory_space<vmem>>, vector<1x32xf32>,
    %c6_i32 = arith.constant 6 : i32
    %143 = arith.index_cast %c6_i32 : i32 to index
    %c0_38 = arith.constant 0 : index
    %144 = vector.load %arg8[%143, %c0_38] : memref<8x128xf32, #tpu.memory_space<vmem>>, vector<1x128xf32>
    %cst_39 = arith.constant dense<0.000000e+00> : vector<1x128xf32>
    %145 = tpu.matmul %140, %14, %cst_39 {dimension_numbers = #tpu.dot_dimension_numbers<[1], [0], [0], [1], [0, 0, 1, 1], [], []>} : vector<1x32xf32>, vector<32x128xf32>, vector<1x128xf32> -> vector<1x128xf32>
    %146 = arith.addf %144, %145 : vector<1x128xf32>
    %147 = arith.negf %146 : vector<1x128xf32>
    %148 = math.exp %147 : vector<1x128xf32>
    %cst_40 = arith.constant 1.000000e+00 : f32
    %149 = vector.broadcast %cst_40 : f32 to vector<1x128xf32>
    %150 = arith.addf %149, %148 : vector<1x128xf32>
    %151 = arith.divf %149, %150 : vector<1x128xf32>
    %152 = math.tanh %146 : vector<1x128xf32>
    %153 = vector.extract_strided_slice %151 {offsets = [0, 0], sizes = [1, 32], strides = [1, 1]} : vector<1x128xf32> to vector<1x32xf32>
    %154 = vector.extract_strided_slice %151 {offsets = [0, 32], sizes = [1, 32], strides = [1, 1]} : vector<1x128xf32> to vector<1x32xf32>
    %155 = vector.extract_strided_slice %152 {offsets = [0, 64], sizes = [1, 32], strides = [1, 1]} : vector<1x128xf32> to vector<1x32xf32>
    %156 = vector.extract_strided_slice %151 {offsets = [0, 96], sizes = [1, 32], strides = [1, 1]} : vector<1x128xf32> to vector<1x32xf32>
    %157 = arith.mulf %154, %138 : vector<1x32xf32>
    %158 = arith.mulf %153, %155 : vector<1x32xf32>
    %159 = arith.addf %157, %158 : vector<1x32xf32>
    %160 = math.tanh %159 : vector<1x32xf32>
    %161 = arith.mulf %156, %160 : vector<1x32xf32>
    %162 = arith.index_cast %c6_i32 : i32 to index
    %c0_41 = arith.constant 0 : index
    %163 = vector.load %arg9[%162, %c0_41] : memref<8x32xf32, #tpu.memory_space<vmem>>, vector<1x32xf32>
    tpu.vector_store %arg9[%162, %c0_41], %161 {strides = array<i32>} : memref<8x32xf32, #tpu.memory_space<vmem>>, vector<1x32xf32>,
    %c7_i32 = arith.constant 7 : i32
    %164 = arith.index_cast %c7_i32 : i32 to index
    %c0_42 = arith.constant 0 : index
    %165 = vector.load %arg8[%164, %c0_42] : memref<8x128xf32, #tpu.memory_space<vmem>>, vector<1x128xf32>
    %cst_43 = arith.constant dense<0.000000e+00> : vector<1x128xf32>
    %166 = tpu.matmul %161, %14, %cst_43 {dimension_numbers = #tpu.dot_dimension_numbers<[1], [0], [0], [1], [0, 0, 1, 1], [], []>} : vector<1x32xf32>, vector<32x128xf32>, vector<1x128xf32> -> vector<1x128xf32>
    %167 = arith.addf %165, %166 : vector<1x128xf32>
    %168 = arith.negf %167 : vector<1x128xf32>
    %169 = math.exp %168 : vector<1x128xf32>
    %cst_44 = arith.constant 1.000000e+00 : f32
    %170 = vector.broadcast %cst_44 : f32 to vector<1x128xf32>
    %171 = arith.addf %170, %169 : vector<1x128xf32>
    %172 = arith.divf %170, %171 : vector<1x128xf32>
    %173 = math.tanh %167 : vector<1x128xf32>
    %174 = vector.extract_strided_slice %172 {offsets = [0, 0], sizes = [1, 32], strides = [1, 1]} : vector<1x128xf32> to vector<1x32xf32>
    %175 = vector.extract_strided_slice %172 {offsets = [0, 32], sizes = [1, 32], strides = [1, 1]} : vector<1x128xf32> to vector<1x32xf32>
    %176 = vector.extract_strided_slice %173 {offsets = [0, 64], sizes = [1, 32], strides = [1, 1]} : vector<1x128xf32> to vector<1x32xf32>
    %177 = vector.extract_strided_slice %172 {offsets = [0, 96], sizes = [1, 32], strides = [1, 1]} : vector<1x128xf32> to vector<1x32xf32>
    %178 = arith.mulf %175, %159 : vector<1x32xf32>
    %179 = arith.mulf %174, %176 : vector<1x32xf32>
    %180 = arith.addf %178, %179 : vector<1x32xf32>
    %181 = math.tanh %180 : vector<1x32xf32>
    %182 = arith.mulf %177, %181 : vector<1x32xf32>
    %183 = arith.index_cast %c7_i32 : i32 to index
    %c0_45 = arith.constant 0 : index
    %184 = vector.load %arg9[%183, %c0_45] : memref<8x32xf32, #tpu.memory_space<vmem>>, vector<1x32xf32>
    tpu.vector_store %arg9[%183, %c0_45], %182 {strides = array<i32>} : memref<8x32xf32, #tpu.memory_space<vmem>>, vector<1x32xf32>,
    %c8_i32 = arith.constant 8 : i32
    %c0_46 = arith.constant 0 : index
    %c0_47 = arith.constant 0 : index
    %185 = vector.load %arg9[%c0_46, %c0_47] : memref<8x32xf32, #tpu.memory_space<vmem>>, vector<8x32xf32>
    %c0_48 = arith.constant 0 : index
    %c0_49 = arith.constant 0 : index
    %186 = vector.load %arg5[%c0_48, %c0_49] : memref<32x128xf32, #tpu.memory_space<vmem>>, vector<32x128xf32>
    %cst_50 = arith.constant dense<0.000000e+00> : vector<8x128xf32>
    %187 = tpu.matmul %185, %186, %cst_50 {dimension_numbers = #tpu.dot_dimension_numbers<[1], [0], [0], [1], [0, 0, 1, 1], [], []>} : vector<8x32xf32>, vector<32x128xf32>, vector<8x128xf32> -> vector<8x128xf32>
    %c0_51 = arith.constant 0 : index
    %c0_52 = arith.constant 0 : index
    %188 = vector.load %arg6[%c0_51, %c0_52] : memref<1x128xf32, #tpu.memory_space<vmem>>, vector<1x128xf32>
    %189 = vector.broadcast %188 : vector<1x128xf32> to vector<8x128xf32>
    %190 = arith.addf %187, %189 : vector<8x128xf32>
    %c0_53 = arith.constant 0 : index
    %c0_54 = arith.constant 0 : index
    %191 = vector.load %arg7[%c0_53, %c0_54] : memref<8x128xf32, #tpu.memory_space<vmem>>, vector<8x128xf32>
    tpu.vector_store %arg7[%c0_53, %c0_54], %190 {strides = array<i32>} : memref<8x128xf32, #tpu.memory_space<vmem>>, vector<8x128xf32>,
    return
  }
}

</mosaic_0001>

<bundles_post_ra>
// kernel: lstm_lm_forward.1
= control target key start
LH: loop header
LB: loop body
LE: loop exit
PB: predicated region body
PF: predicated region fallthrough
CT: control target
= control target key end

     0   :  { %v801_v3 = vmov 0   ;;  %s967_s0 = inlined_call_operand.vmem [shape: s32[8,1], index: 0, kind: input, shape index: {}]   ;;  %s968_s1 = inlined_call_operand.vmem [shape: f32[64,32], index: 1, kind: input, shape index: {}]   ;;  %s969_s2 = inlined_call_operand.vmem [shape: f32[32,128], index: 2, kind: input, shape index: {}]   ;;  %s970_s3 = inlined_call_operand.vmem [shape: f32[32,128], index: 3, kind: input, shape index: {}]   ;;  %s971_s4 = inlined_call_operand.vmem [shape: f32[1,128], index: 4, kind: input, shape index: {}]   ;;  %s972_s5 = inlined_call_operand.vmem [shape: f32[32,128], index: 5, kind: input, shape index: {}]   ;;  %s973_s6 = inlined_call_operand.vmem [shape: f32[1,128], index: 6, kind: input, shape index: {}]   ;;  %s974_s7 = inlined_call_operand.hbm [shape: f32[8,128], index: 7, kind: output, shape index: {}]  }
   0x1   :  { %v29_v0 = vld [vmem:[%s967_s0] sm:$0xff]  ;;  %v43_v1 = vld [vmem:[%s968_s1 + $0x38] sm:$0xff]  ;;  %v42_v2 = vld [vmem:[%s968_s1 + $0x30] sm:$0xff]  ;;  %708 = vset.pattern.permute.xlu0 %v801_v3 }
   0x2   :  { %56 = vmatpush.msra.mxu0 %v43_v1  ;;  %31 = vperm.xlu0 %708, %v29_v0   ;;  %v41_v4 = vld [vmem:[%s968_s1 + $0x28] sm:$0xff] }
   0x4   :  { %57 = vmatpush.msra.mxu0 %v42_v2 }
   0x5   :  { %12 = vsyncpa [#allocation5], 0  ;;  %v40_v5 = vld [vmem:[%s968_s1 + $0x20] sm:$0xff]  ;;  %v39_v6 = vld [vmem:[%s968_s1 + $0x18] sm:$0xff]  ;;  %v27_v14 = vlaneseq  ;;  %vm44_vm0 = vcmask 523264   ;;  %v802_v17 = vmov 0.0  }
   0x6   :  { %58 = vmatpush.msra.mxu0 %v41_v4  ;;  %v38_v7 = vld [vmem:[%s968_s1 + $0x10] sm:$0xff]  ;;  %v37_v8 = vld [vmem:[%s968_s1 + $0x8] sm:$0xff]  ;;  %v36_v9 = vld [vmem:[%s968_s1] sm:$0xff]  ;;  %vm76_vm2 = vcmask 261120   ;;  %s803_s0 = smov 64   ;;  %vm171_vm7 = vcmask 253952  }
   0x7   :  { %v71_v10 = vld [vmem:[%s969_s2 + $0x18] sm:$0xff]  ;;  %v70_v11 = vld [vmem:[%s969_s2 + $0x10] sm:$0xff]  ;;  %v69_v13 = vld [vmem:[%s969_s2 + $0x8] sm:$0xff]  ;;  %v28_v15 = vand.u32 127, %v27_v14  ;;  %s805_s20 = smov [#allocation4]   ;;  %s675_s24 = sshll.u32 %s974_s7, 4  ;;  %s676_s24 = int_to_ptr.hbm [resolvable:$true] %s675_s24 }
   0x8   :  { %59 = vmatpush.msra.mxu0 %v40_v5  ;;  %92 = vmatpush.msra.mxu1 %v71_v10  ;;  %v104_v12 = vld [vmem:[%s970_s3 + $0x18] sm:$0xff]  ;;  %v68_v19 = vld [vmem:[%s969_s2] sm:$0xff]  ;;  %v103_v20 = vld [vmem:[%s970_s3 + $0x10] sm:$0xff]  ;;  %s673_s21 = sshll.u32 %s805_s20, 4  ;;  %s674_s21 = int_to_ptr.vmem [resolvable:$true] %s673_s21 }
   0x9   :  { %121 = vmatpush.msra.mxu2 %v104_v12  ;;  %188 = vmatpush.msra.mxu3 %v104_v12  ;;  %v102_v21 = vld [vmem:[%s970_s3 + $0x8] sm:$0xff]  ;;  %v101_v22 = vld [vmem:[%s970_s3] sm:$0xff] }
   0xa   :  { %60 = vmatpush.msra.mxu0 %v39_v6  ;;  %93 = vmatpush.msra.mxu1 %v70_v11  ;;  %v709_v24 = vld [vmem:[%s971_s4] ss:$0 sm:$0xff]  ;;  %s804_s4 = smov 32  }
   0xb   :  { %122 = vmatpush.msra.mxu2 %v103_v20  ;;  %189 = vmatpush.msra.mxu3 %v103_v20 }
   0xc   :  { %61 = vmatpush.msra.mxu0 %v38_v7  ;;  %94 = vmatpush.msra.mxu1 %v69_v13 }
   0xd   :  { %123 = vmatpush.msra.mxu2 %v102_v21  ;;  %190 = vmatpush.msra.mxu3 %v102_v21 }
   0xe   :  { %62 = vmatpush.msra.mxu0 %v37_v8  ;;  %95 = vmatpush.msra.mxu1 %v68_v19 }
   0xf   :  { %124 = vmatpush.msra.mxu2 %v101_v22  ;;  %191 = vmatpush.msra.mxu3 %v101_v22 }
  0x10   :  { %63 = vmatpush.msra.mxu0 %v36_v9  ;;  %254 = vmatpush.msrb.mxu1 %v104_v12 }
  0x11   :  { %125 = vmatmul.f32.vlgmr.msra.gmra.mxu2 %v802_v17  ;;  %386 = vmatpush.msrb.mxu3 %v104_v12 }
  0x12   :  { %452 = vmatpush.msrb.mxu0 %v104_v12  ;;  %255 = vmatpush.msrb.mxu1 %v103_v20 }
  0x13   :  { %320 = vmatpush.msrb.mxu2 %v104_v12  ;;  %387 = vmatpush.msrb.mxu3 %v103_v20 }
  0x14   :  { %453 = vmatpush.msrb.mxu0 %v103_v20  ;;  %256 = vmatpush.msrb.mxu1 %v102_v21 }
  0x15   :  { %321 = vmatpush.msrb.mxu2 %v103_v20  ;;  %388 = vmatpush.msrb.mxu3 %v102_v21 }
  0x16   :  { %454 = vmatpush.msrb.mxu0 %v102_v21  ;;  %257 = vmatpush.msrb.mxu1 %v101_v22 }
  0x17   :  { %322 = vmatpush.msrb.mxu2 %v102_v21  ;;  %389 = vmatpush.msrb.mxu3 %v101_v22 }
  0x18   :  { %455 = vmatpush.msrb.mxu0 %v101_v22 }
  0x19   :  { %323 = vmatpush.msrb.mxu2 %v101_v22 }
  0x1b   :  { %584 = vmatpush.msra.mxu2 %v104_v12 }
  0x1d   :  { %585 = vmatpush.msra.mxu2 %v103_v20 }
  0x1f   :  { %586 = vmatpush.msra.mxu2 %v102_v21 }
  0x21   :  { %587 = vmatpush.msra.mxu2 %v101_v22 }
  0x74   :  { %v32_v16 = vpop.permute.xlu0 %31 }
  0x75   :  { %vm33_vm1 = vcmp.eq.s32.totalorder %v28_v15, %v32_v16 }
  0x76   :  { %v684_v18 = vsel %vm33_vm1, 1.0, %v802_v17 }
  0x77   :  { %685 = vmatmul.msk.f32.vlgmr.msra.gmra.mxu0 %vm44_vm0, %v684_v18 }
  0x94   :  { %v126_v27 = vpop.f32.mrf.mxu2 }
  0xf4   :  { %v65_v23 = vpop.f32.mrf.mxu0 }
  0xf5   :  { %686 = vmatmul.msk.f32.vlgmr.msra.gmra.mxu1 %vm76_vm2, %v65_v23 }
  0xf6   :  { %518 = vmatpush.msra.mxu1 %v104_v12 }
  0xf8   :  { %519 = vmatpush.msra.mxu1 %v103_v20 }
  0xfa   :  { %520 = vmatpush.msra.mxu1 %v102_v21 }
  0xfc   :  { %521 = vmatpush.msra.mxu1 %v101_v22 }
 0x172   :  { %v97_v25 = vpop.f32.mrf.mxu1 }
 0x173   :  { %v98_v26 = vadd.f32 %v709_v24, %v97_v25 }
 0x175   :  { %100 = vst [vmem:[#allocation2] sm:$0xff] %v98_v26 }
 0x17c   :  { %v105_v28 = vld [vmem:[#allocation2] sm:$0x1]  ;;  %v173_v53 = vld [vmem:[#allocation2 + $0x1] sm:$0x1]  ;;  %v239_v15 = vld [vmem:[#allocation2 + $0x2] sm:$0x1] }
 0x17d   :  { %v129_v29 = vadd.f32 %v126_v27, %v105_v28 }
 0x17f   :  { %711 = vtanh.f32 %v129_v29  ;;  %v687_v31 = vmul.f32 -1.442695, %v129_v29 }
 0x181   :  { %713 = vpow2.f32 %v687_v31 }
 0x185   :  { %v712_v30 = vpop.eup %711 }
 0x186   :  { %152 = vrot.lane.b32.xlu0 %v712_v30, %s803_s0 }
 0x187   :  { %v714_v32 = vpop.eup %713 }
 0x188   :  { %v133_v33 = vadd.f32 1.0, %v714_v32 }
 0x18a   :  { %715 = vrcp.f32 %v133_v33  ;;  %v145_v39 = vand.u32 2147483648, %v133_v33  ;;  %vm139_vm4 = vweird.f32 %v133_v33  ;;  %v143_v40 = vand.u32 2147483647, %v133_v33 }
 0x18c   :  { %v146_v42 = vor.u32 1.1754944e-38, %v145_v39  ;;  %vm144_vm6 = vcmp.eq.f32.partialorder %v143_v40, 8.507059e+37 }
 0x190   :  { %v716_v34 = vpop.eup %715 }
 0x191   :  { %v135_v35 = vmul.f32 %v716_v34, %v133_v33  ;;  %vm140_vm3 = vweird.f32 %v716_v34 }
 0x192   :  { %vm141_vm5 = vmor %vm139_vm4, %vm140_vm3 }
 0x193   :  { %v136_v36 = vsub.f32 1.0, %v135_v35 }
 0x195   :  { %v137_v37 = vmul.f32 %v716_v34, %v136_v36 }
 0x197   :  { %v138_v38 = vadd.f32 %v716_v34, %v137_v37 }
 0x199   :  { %v142_v41 = vsel %vm141_vm5, %v716_v34, %v138_v38 }
 0x19a   :  { %v147_v44 = vsel %vm144_vm6, %v146_v42, %v142_v41  ;;  %v305_v41 = vld [vmem:[#allocation2 + $0x3] sm:$0x1] }
 0x19b   :  { %v150_v46 = vmul.f32 0.0, %v147_v44 }
 0x1f8   :  { %v153_v43 = vpop.permute.xlu0 %152 }
 0x1f9   :  { %v155_v45 = vmul.f32 %v153_v43, %v147_v44 }
 0x1fb   :  { %157 = vrot.lane.b32.xlu1 %v155_v45, %s804_s4 }
 0x26d   :  { %v158_v47 = vpop.permute.xlu1 %157 }
 0x26e   :  { %v160_v48 = vadd.f32 %v158_v47, %v150_v46 }
 0x270   :  { %717 = vtanh.f32 %v160_v48 }
 0x276   :  { %v718_v49 = vpop.eup %717 }
 0x277   :  { %163 = vrot.lane.b32.xlu1 %v718_v49, %s803_s0 }
 0x2e9   :  { %v164_v50 = vpop.permute.xlu1 %163 }
 0x2ea   :  { %v166_v51 = vmul.f32 %v164_v50, %v147_v44 }
 0x2ec   :  { %168 = vrot.lane.b32.xlu2 %v166_v51, %s804_s4 }
 0x346   :  { %v169_v52 = vpop.permute.xlu2 %168 }
 0x347   :  { %172 = vst.msk [vmem:[#allocation3] sm:$0x1] %vm171_vm7, %v169_v52  ;;  %688 = vmatmul.msk.f32.vlgmr.msra.gmra.mxu3 %vm76_vm2, %v169_v52 }
 0x3ca   :  { %v193_v54 = vpop.f32.mrf.mxu3 }
 0x3cb   :  { %v196_v55 = vadd.f32 %v193_v54, %v173_v53 }
 0x3cd   :  { %719 = vtanh.f32 %v196_v55  ;;  %v689_v57 = vmul.f32 -1.442695, %v196_v55 }
 0x3cf   :  { %721 = vpow2.f32 %v689_v57 }
 0x3d3   :  { %v720_v56 = vpop.eup %719 }
 0x3d4   :  { %219 = vrot.lane.b32.xlu2 %v720_v56, %s803_s0 }
 0x3d5   :  { %v722_v58 = vpop.eup %721 }
 0x3d6   :  { %v200_v59 = vadd.f32 1.0, %v722_v58 }
 0x3d8   :  { %723 = vrcp.f32 %v200_v59  ;;  %v212_v1 = vand.u32 2147483648, %v200_v59  ;;  %vm206_vm9 = vweird.f32 %v200_v59  ;;  %v210_v2 = vand.u32 2147483647, %v200_v59 }
 0x3da   :  { %v213_v4 = vor.u32 1.1754944e-38, %v212_v1  ;;  %vm211_vm11 = vcmp.eq.f32.partialorder %v210_v2, 8.507059e+37 }
 0x3de   :  { %v724_v60 = vpop.eup %723 }
 0x3df   :  { %v202_v61 = vmul.f32 %v724_v60, %v200_v59  ;;  %vm207_vm8 = vweird.f32 %v724_v60 }
 0x3e0   :  { %vm208_vm10 = vmor %vm206_vm9, %vm207_vm8 }
 0x3e1   :  { %v203_v62 = vsub.f32 1.0, %v202_v61 }
 0x3e3   :  { %v204_v63 = vmul.f32 %v724_v60, %v203_v62 }
 0x3e5   :  { %v205_v0 = vadd.f32 %v724_v60, %v204_v63 }
 0x3e7   :  { %v209_v3 = vsel %vm208_vm10, %v724_v60, %v205_v0 }
 0x3e8   :  { %v214_v6 = vsel %vm211_vm11, %v213_v4, %v209_v3  ;;  %v371_v3 = vld [vmem:[#allocation2 + $0x4] sm:$0x1] }
 0x3e9   :  { %v217_v8 = vmul.f32 %v214_v6, %v160_v48 }
 0x42e   :  { %v220_v5 = vpop.permute.xlu2 %219 }
 0x42f   :  { %v222_v7 = vmul.f32 %v220_v5, %v214_v6 }
 0x431   :  { %224 = vrot.lane.b32.xlu0 %v222_v7, %s804_s4 }
 0x4a3   :  { %v225_v9 = vpop.permute.xlu0 %224 }
 0x4a4   :  { %v227_v10 = vadd.f32 %v225_v9, %v217_v8 }
 0x4a6   :  { %725 = vtanh.f32 %v227_v10 }
 0x4ac   :  { %v726_v11 = vpop.eup %725 }
 0x4ad   :  { %230 = vrot.lane.b32.xlu1 %v726_v11, %s803_s0 }
 0x51f   :  { %v231_v12 = vpop.permute.xlu1 %230 }
 0x520   :  { %v233_v13 = vmul.f32 %v231_v12, %v214_v6 }
 0x522   :  { %235 = vrot.lane.b32.xlu2 %v233_v13, %s804_s4 }
 0x57c   :  { %v236_v14 = vpop.permute.xlu2 %235 }
 0x57d   :  { %238 = vst.msk [vmem:[#allocation3 + $0x1] sm:$0x1] %vm171_vm7, %v236_v14  ;;  %690 = vmatmul.msk.f32.vlgmr.msrb.gmra.mxu1 %vm76_vm2, %v236_v14 }
 0x5fa   :  { %v259_v16 = vpop.f32.mrf.mxu1 }
 0x5fb   :  { %v262_v17 = vadd.f32 %v259_v16, %v239_v15 }
 0x5fd   :  { %727 = vtanh.f32 %v262_v17  ;;  %v691_v19 = vmul.f32 -1.442695, %v262_v17 }
 0x5ff   :  { %729 = vpow2.f32 %v691_v19 }
 0x603   :  { %v728_v18 = vpop.eup %727 }
 0x604   :  { %285 = vrot.lane.b32.xlu0 %v728_v18, %s803_s0 }
 0x605   :  { %v730_v20 = vpop.eup %729 }
 0x606   :  { %v266_v21 = vadd.f32 1.0, %v730_v20 }
 0x608   :  { %731 = vrcp.f32 %v266_v21  ;;  %v278_v27 = vand.u32 2147483648, %v266_v21  ;;  %vm272_vm13 = vweird.f32 %v266_v21  ;;  %v276_v28 = vand.u32 2147483647, %v266_v21 }
 0x60a   :  { %v279_v30 = vor.u32 1.1754944e-38, %v278_v27  ;;  %vm277_vm15 = vcmp.eq.f32.partialorder %v276_v28, 8.507059e+37 }
 0x60e   :  { %v732_v22 = vpop.eup %731 }
 0x60f   :  { %v268_v23 = vmul.f32 %v732_v22, %v266_v21  ;;  %vm273_vm12 = vweird.f32 %v732_v22 }
 0x610   :  { %vm274_vm14 = vmor %vm272_vm13, %vm273_vm12 }
 0x611   :  { %v269_v24 = vsub.f32 1.0, %v268_v23 }
 0x613   :  { %v270_v25 = vmul.f32 %v732_v22, %v269_v24 }
 0x615   :  { %v271_v26 = vadd.f32 %v732_v22, %v270_v25 }
 0x617   :  { %v275_v29 = vsel %vm274_vm14, %v732_v22, %v271_v26 }
 0x618   :  { %v280_v32 = vsel %vm277_vm15, %v279_v30, %v275_v29  ;;  %v437_v29 = vld [vmem:[#allocation2 + $0x5] sm:$0x1] }
 0x619   :  { %v283_v34 = vmul.f32 %v280_v32, %v227_v10 }
 0x676   :  { %v286_v31 = vpop.permute.xlu0 %285 }
 0x677   :  { %v288_v33 = vmul.f32 %v286_v31, %v280_v32 }
 0x679   :  { %290 = vrot.lane.b32.xlu1 %v288_v33, %s804_s4 }
 0x6eb   :  { %v291_v35 = vpop.permute.xlu1 %290 }
 0x6ec   :  { %v293_v36 = vadd.f32 %v291_v35, %v283_v34 }
 0x6ee   :  { %733 = vtanh.f32 %v293_v36 }
 0x6f4   :  { %v734_v37 = vpop.eup %733 }
 0x6f5   :  { %296 = vrot.lane.b32.xlu2 %v734_v37, %s803_s0 }
 0x74f   :  { %v297_v38 = vpop.permute.xlu2 %296 }
 0x750   :  { %v299_v39 = vmul.f32 %v297_v38, %v280_v32 }
 0x752   :  { %301 = vrot.lane.b32.xlu0 %v299_v39, %s804_s4 }
 0x7c4   :  { %v302_v40 = vpop.permute.xlu0 %301 }
 0x7c5   :  { %304 = vst.msk [vmem:[#allocation3 + $0x2] sm:$0x1] %vm171_vm7, %v302_v40  ;;  %692 = vmatmul.msk.f32.vlgmr.msrb.gmra.mxu2 %vm76_vm2, %v302_v40 }
 0x848   :  { %v325_v42 = vpop.f32.mrf.mxu2 }
 0x849   :  { %v328_v43 = vadd.f32 %v325_v42, %v305_v41 }
 0x84b   :  { %735 = vtanh.f32 %v328_v43  ;;  %v693_v45 = vmul.f32 -1.442695, %v328_v43 }
 0x84d   :  { %737 = vpow2.f32 %v693_v45 }
 0x851   :  { %v736_v44 = vpop.eup %735 }
 0x852   :  { %351 = vrot.lane.b32.xlu1 %v736_v44, %s803_s0 }
 0x853   :  { %v738_v46 = vpop.eup %737 }
 0x854   :  { %v332_v47 = vadd.f32 1.0, %v738_v46 }
 0x856   :  { %739 = vrcp.f32 %v332_v47  ;;  %v344_v53 = vand.u32 2147483648, %v332_v47  ;;  %vm338_vm1 = vweird.f32 %v332_v47  ;;  %v342_v54 = vand.u32 2147483647, %v332_v47 }
 0x858   :  { %v345_v56 = vor.u32 1.1754944e-38, %v344_v53  ;;  %vm343_vm4 = vcmp.eq.f32.partialorder %v342_v54, 8.507059e+37 }
 0x85c   :  { %v740_v48 = vpop.eup %739 }
 0x85d   :  { %v334_v49 = vmul.f32 %v740_v48, %v332_v47  ;;  %vm339_vm0 = vweird.f32 %v740_v48 }
 0x85e   :  { %vm340_vm3 = vmor %vm338_vm1, %vm339_vm0 }
 0x85f   :  { %v335_v50 = vsub.f32 1.0, %v334_v49 }
 0x861   :  { %v336_v51 = vmul.f32 %v740_v48, %v335_v50 }
 0x863   :  { %v337_v52 = vadd.f32 %v740_v48, %v336_v51 }
 0x865   :  { %v341_v55 = vsel %vm340_vm3, %v740_v48, %v337_v52 }
 0x866   :  { %v346_v58 = vsel %vm343_vm4, %v345_v56, %v341_v55  ;;  %v503_v55 = vld [vmem:[#allocation2 + $0x6] sm:$0x1] }
 0x867   :  { %v349_v60 = vmul.f32 %v346_v58, %v293_v36 }
 0x8c4   :  { %v352_v57 = vpop.permute.xlu1 %351 }
 0x8c5   :  { %v354_v59 = vmul.f32 %v352_v57, %v346_v58 }
 0x8c7   :  { %356 = vrot.lane.b32.xlu2 %v354_v59, %s804_s4 }
 0x921   :  { %v357_v61 = vpop.permute.xlu2 %356 }
 0x922   :  { %v359_v62 = vadd.f32 %v357_v61, %v349_v60 }
 0x924   :  { %741 = vtanh.f32 %v359_v62 }
 0x92a   :  { %v742_v63 = vpop.eup %741 }
 0x92b   :  { %362 = vrot.lane.b32.xlu0 %v742_v63, %s803_s0 }
 0x99d   :  { %v363_v0 = vpop.permute.xlu0 %362 }
 0x99e   :  { %v365_v1 = vmul.f32 %v363_v0, %v346_v58 }
 0x9a0   :  { %367 = vrot.lane.b32.xlu1 %v365_v1, %s804_s4 }
 0xa12   :  { %v368_v2 = vpop.permute.xlu1 %367 }
 0xa13   :  { %370 = vst.msk [vmem:[#allocation3 + $0x3] sm:$0x1] %vm171_vm7, %v368_v2  ;;  %694 = vmatmul.msk.f32.vlgmr.msrb.gmra.mxu3 %vm76_vm2, %v368_v2 }
 0xa96   :  { %v391_v4 = vpop.f32.mrf.mxu3 }
 0xa97   :  { %v394_v5 = vadd.f32 %v391_v4, %v371_v3 }
 0xa99   :  { %743 = vtanh.f32 %v394_v5  ;;  %v695_v7 = vmul.f32 -1.442695, %v394_v5 }
 0xa9b   :  { %745 = vpow2.f32 %v695_v7 }
 0xa9f   :  { %v744_v6 = vpop.eup %743 }
 0xaa0   :  { %417 = vrot.lane.b32.xlu2 %v744_v6, %s803_s0 }
 0xaa1   :  { %v746_v8 = vpop.eup %745 }
 0xaa2   :  { %v398_v9 = vadd.f32 1.0, %v746_v8 }
 0xaa4   :  { %747 = vrcp.f32 %v398_v9  ;;  %v410_v15 = vand.u32 2147483648, %v398_v9  ;;  %vm404_vm6 = vweird.f32 %v398_v9  ;;  %v408_v16 = vand.u32 2147483647, %v398_v9 }
 0xaa6   :  { %v411_v18 = vor.u32 1.1754944e-38, %v410_v15  ;;  %vm409_vm9 = vcmp.eq.f32.partialorder %v408_v16, 8.507059e+37 }
 0xaaa   :  { %v748_v10 = vpop.eup %747 }
 0xaab   :  { %v400_v11 = vmul.f32 %v748_v10, %v398_v9  ;;  %vm405_vm5 = vweird.f32 %v748_v10 }
 0xaac   :  { %vm406_vm8 = vmor %vm404_vm6, %vm405_vm5 }
 0xaad   :  { %v401_v12 = vsub.f32 1.0, %v400_v11 }
 0xaaf   :  { %v402_v13 = vmul.f32 %v748_v10, %v401_v12 }
 0xab1   :  { %v403_v14 = vadd.f32 %v748_v10, %v402_v13 }
 0xab3   :  { %v407_v17 = vsel %vm406_vm8, %v748_v10, %v403_v14 }
 0xab4   :  { %v412_v20 = vsel %vm409_vm9, %v411_v18, %v407_v17  ;;  %v569_v17 = vld [vmem:[#allocation2 + $0x7] sm:$0x1] }
 0xab5   :  { %v415_v22 = vmul.f32 %v412_v20, %v359_v62 }
 0xafa   :  { %v418_v19 = vpop.permute.xlu2 %417 }
 0xafb   :  { %v420_v21 = vmul.f32 %v418_v19, %v412_v20 }
 0xafd   :  { %422 = vrot.lane.b32.xlu0 %v420_v21, %s804_s4 }
 0xb6f   :  { %v423_v23 = vpop.permute.xlu0 %422 }
 0xb70   :  { %v425_v24 = vadd.f32 %v423_v23, %v415_v22 }
 0xb72   :  { %749 = vtanh.f32 %v425_v24 }
 0xb78   :  { %v750_v25 = vpop.eup %749 }
 0xb79   :  { %428 = vrot.lane.b32.xlu1 %v750_v25, %s803_s0 }
 0xbeb   :  { %v429_v26 = vpop.permute.xlu1 %428 }
 0xbec   :  { %v431_v27 = vmul.f32 %v429_v26, %v412_v20 }
 0xbee   :  { %433 = vrot.lane.b32.xlu2 %v431_v27, %s804_s4 }
 0xc48   :  { %v434_v28 = vpop.permute.xlu2 %433 }
 0xc49   :  { %436 = vst.msk [vmem:[#allocation3 + $0x4] sm:$0x1] %vm171_vm7, %v434_v28  ;;  %696 = vmatmul.msk.f32.vlgmr.msrb.gmra.mxu0 %vm76_vm2, %v434_v28 }
 0xcc6   :  { %v457_v30 = vpop.f32.mrf.mxu0 }
 0xcc7   :  { %v460_v31 = vadd.f32 %v457_v30, %v437_v29 }
 0xcc9   :  { %751 = vtanh.f32 %v460_v31  ;;  %v697_v33 = vmul.f32 -1.442695, %v460_v31 }
 0xccb   :  { %753 = vpow2.f32 %v697_v33 }
 0xccf   :  { %v752_v32 = vpop.eup %751 }
 0xcd0   :  { %483 = vrot.lane.b32.xlu0 %v752_v32, %s803_s0 }
 0xcd1   :  { %v754_v34 = vpop.eup %753 }
 0xcd2   :  { %v464_v35 = vadd.f32 1.0, %v754_v34 }
 0xcd4   :  { %755 = vrcp.f32 %v464_v35  ;;  %v476_v41 = vand.u32 2147483648, %v464_v35  ;;  %vm470_vm11 = vweird.f32 %v464_v35  ;;  %v474_v42 = vand.u32 2147483647, %v464_v35 }
 0xcd6   :  { %v477_v44 = vor.u32 1.1754944e-38, %v476_v41  ;;  %vm475_vm13 = vcmp.eq.f32.partialorder %v474_v42, 8.507059e+37  ;;  %v639_v42 = vld [vmem:[%s972_s5 + $0x18] sm:$0xff] }
 0xcd7   :  { %659 = vmatpush.msra.mxu3 %v639_v42 }
 0xcda   :  { %v756_v36 = vpop.eup %755 }
 0xcdb   :  { %v466_v37 = vmul.f32 %v756_v36, %v464_v35  ;;  %vm471_vm10 = vweird.f32 %v756_v36 }
 0xcdc   :  { %vm472_vm12 = vmor %vm470_vm11, %vm471_vm10 }
 0xcdd   :  { %v467_v38 = vsub.f32 1.0, %v466_v37 }
 0xcdf   :  { %v468_v39 = vmul.f32 %v756_v36, %v467_v38 }
 0xce1   :  { %v469_v40 = vadd.f32 %v756_v36, %v468_v39 }
 0xce3   :  { %v473_v43 = vsel %vm472_vm12, %v756_v36, %v469_v40 }
 0xce4   :  { %v478_v46 = vsel %vm475_vm13, %v477_v44, %v473_v43  ;;  %v638_v43 = vld [vmem:[%s972_s5 + $0x10] sm:$0xff]  ;;  %v637_v44 = vld [vmem:[%s972_s5 + $0x8] sm:$0xff] }
 0xce5   :  { %v481_v48 = vmul.f32 %v478_v46, %v425_v24  ;;  %660 = vmatpush.msra.mxu3 %v638_v43 }
 0xce7   :  { %661 = vmatpush.msra.mxu3 %v637_v44 }
 0xd42   :  { %v484_v45 = vpop.permute.xlu0 %483 }
 0xd43   :  { %v486_v47 = vmul.f32 %v484_v45, %v478_v46  ;;  %v636_v45 = vld [vmem:[%s972_s5] sm:$0xff] }
 0xd44   :  { %662 = vmatpush.msra.mxu3 %v636_v45 }
 0xd45   :  { %488 = vrot.lane.b32.xlu1 %v486_v47, %s804_s4 }
 0xdb7   :  { %v489_v49 = vpop.permute.xlu1 %488 }
 0xdb8   :  { %v491_v50 = vadd.f32 %v489_v49, %v481_v48  ;;  %v710_v48 = vld [vmem:[%s973_s6] ss:$0 sm:$0xff] }
 0xdba   :  { %757 = vtanh.f32 %v491_v50 }
 0xdc0   :  { %v758_v51 = vpop.eup %757 }
 0xdc1   :  { %494 = vrot.lane.b32.xlu2 %v758_v51, %s803_s0 }
 0xe1b   :  { %v495_v52 = vpop.permute.xlu2 %494 }
 0xe1c   :  { %v497_v53 = vmul.f32 %v495_v52, %v478_v46 }
 0xe1e   :  { %499 = vrot.lane.b32.xlu0 %v497_v53, %s804_s4 }
 0xe90   :  { %v500_v54 = vpop.permute.xlu0 %499 }
 0xe91   :  { %502 = vst.msk [vmem:[#allocation3 + $0x5] sm:$0x1] %vm171_vm7, %v500_v54  ;;  %698 = vmatmul.msk.f32.vlgmr.msra.gmra.mxu1 %vm76_vm2, %v500_v54 }
 0xf0e   :  { %v523_v56 = vpop.f32.mrf.mxu1 }
 0xf0f   :  { %v526_v57 = vadd.f32 %v523_v56, %v503_v55 }
 0xf11   :  { %759 = vtanh.f32 %v526_v57  ;;  %v699_v59 = vmul.f32 -1.442695, %v526_v57 }
 0xf13   :  { %761 = vpow2.f32 %v699_v59 }
 0xf17   :  { %v760_v58 = vpop.eup %759 }
 0xf18   :  { %549 = vrot.lane.b32.xlu1 %v760_v58, %s803_s0 }
 0xf19   :  { %v762_v60 = vpop.eup %761 }
 0xf1a   :  { %v530_v61 = vadd.f32 1.0, %v762_v60 }
 0xf1c   :  { %763 = vrcp.f32 %v530_v61  ;;  %v542_v3 = vand.u32 2147483648, %v530_v61  ;;  %vm536_vm15 = vweird.f32 %v530_v61  ;;  %v540_v4 = vand.u32 2147483647, %v530_v61 }
 0xf1e   :  { %v543_v6 = vor.u32 1.1754944e-38, %v542_v3  ;;  %vm541_vm1 = vcmp.eq.f32.partialorder %v540_v4, 8.507059e+37 }
 0xf22   :  { %v764_v62 = vpop.eup %763 }
 0xf23   :  { %v532_v63 = vmul.f32 %v764_v62, %v530_v61  ;;  %vm537_vm14 = vweird.f32 %v764_v62 }
 0xf24   :  { %vm538_vm0 = vmor %vm536_vm15, %vm537_vm14 }
 0xf25   :  { %v533_v0 = vsub.f32 1.0, %v532_v63 }
 0xf27   :  { %v534_v1 = vmul.f32 %v764_v62, %v533_v0 }
 0xf29   :  { %v535_v2 = vadd.f32 %v764_v62, %v534_v1 }
 0xf2b   :  { %v539_v5 = vsel %vm538_vm0, %v764_v62, %v535_v2 }
 0xf2c   :  { %v544_v8 = vsel %vm541_vm1, %v543_v6, %v539_v5 }
 0xf2d   :  { %v547_v10 = vmul.f32 %v544_v8, %v491_v50 }
 0xf8a   :  { %v550_v7 = vpop.permute.xlu1 %549 }
 0xf8b   :  { %v552_v9 = vmul.f32 %v550_v7, %v544_v8 }
 0xf8d   :  { %554 = vrot.lane.b32.xlu2 %v552_v9, %s804_s4 }
 0xfe7   :  { %v555_v11 = vpop.permute.xlu2 %554 }
 0xfe8   :  { %v557_v12 = vadd.f32 %v555_v11, %v547_v10 }
 0xfea   :  { %765 = vtanh.f32 %v557_v12 }
 0xff0   :  { %v766_v13 = vpop.eup %765 }
 0xff1   :  { %560 = vrot.lane.b32.xlu0 %v766_v13, %s803_s0 }
0x1063   :  { %v561_v14 = vpop.permute.xlu0 %560 }
0x1064   :  { %v563_v15 = vmul.f32 %v561_v14, %v544_v8 }
0x1066   :  { %565 = vrot.lane.b32.xlu1 %v563_v15, %s804_s4 }
0x10d8   :  { %v566_v16 = vpop.permute.xlu1 %565 }
0x10d9   :  { %568 = vst.msk [vmem:[#allocation3 + $0x6] sm:$0x1] %vm171_vm7, %v566_v16  ;;  %700 = vmatmul.msk.f32.vlgmr.msra.gmra.mxu2 %vm76_vm2, %v566_v16 }
0x115c   :  { %v589_v18 = vpop.f32.mrf.mxu2 }
0x115d   :  { %v592_v19 = vadd.f32 %v589_v18, %v569_v17 }
0x115f   :  { %767 = vtanh.f32 %v592_v19  ;;  %v701_v21 = vmul.f32 -1.442695, %v592_v19 }
0x1161   :  { %769 = vpow2.f32 %v701_v21 }
0x1165   :  { %v768_v20 = vpop.eup %767 }
0x1166   :  { %615 = vrot.lane.b32.xlu2 %v768_v20, %s803_s0 }
0x1167   :  { %v770_v22 = vpop.eup %769 }
0x1168   :  { %v596_v23 = vadd.f32 1.0, %v770_v22 }
0x116a   :  { %771 = vrcp.f32 %v596_v23  ;;  %v608_v29 = vand.u32 2147483648, %v596_v23  ;;  %vm602_vm4 = vweird.f32 %v596_v23  ;;  %v606_v30 = vand.u32 2147483647, %v596_v23 }
0x116c   :  { %v609_v32 = vor.u32 1.1754944e-38, %v608_v29  ;;  %vm607_vm6 = vcmp.eq.f32.partialorder %v606_v30, 8.507059e+37 }
0x1170   :  { %v772_v24 = vpop.eup %771 }
0x1171   :  { %v598_v25 = vmul.f32 %v772_v24, %v596_v23  ;;  %vm603_vm3 = vweird.f32 %v772_v24 }
0x1172   :  { %vm604_vm5 = vmor %vm602_vm4, %vm603_vm3 }
0x1173   :  { %v599_v26 = vsub.f32 1.0, %v598_v25 }
0x1175   :  { %v600_v27 = vmul.f32 %v772_v24, %v599_v26 }
0x1177   :  { %v601_v28 = vadd.f32 %v772_v24, %v600_v27 }
0x1179   :  { %v605_v31 = vsel %vm604_vm5, %v772_v24, %v601_v28 }
0x117a   :  { %v610_v34 = vsel %vm607_vm6, %v609_v32, %v605_v31 }
0x117b   :  { %v613_v36 = vmul.f32 %v610_v34, %v557_v12 }
0x11c0   :  { %v616_v33 = vpop.permute.xlu2 %615 }
0x11c1   :  { %v618_v35 = vmul.f32 %v616_v33, %v610_v34 }
0x11c3   :  { %620 = vrot.lane.b32.xlu0 %v618_v35, %s804_s4 }
0x1235   :  { %v621_v37 = vpop.permute.xlu0 %620 }
0x1236   :  { %v623_v38 = vadd.f32 %v621_v37, %v613_v36 }
0x1238   :  { %773 = vtanh.f32 %v623_v38 }
0x123e   :  { %v774_v39 = vpop.eup %773 }
0x123f   :  { %626 = vrot.lane.b32.xlu1 %v774_v39, %s803_s0 }
0x12b1   :  { %v627_v40 = vpop.permute.xlu1 %626 }
0x12b2   :  { %v629_v41 = vmul.f32 %v627_v40, %v610_v34 }
0x12b4   :  { %631 = vrot.lane.b32.xlu2 %v629_v41, %s804_s4 }
0x130e   :  { %v632_v46 = vpop.permute.xlu2 %631 }
0x130f   :  { %634 = vst.msk [vmem:[#allocation3 + $0x7] sm:$0x1] %vm171_vm7, %v632_v46 }
0x1316   :  { %v635_v47 = vld [vmem:[#allocation3] sm:$0xff] }
0x1317   :  { %702 = vmatmul.msk.f32.vlgmr.msra.gmra.mxu3 %vm76_vm2, %v635_v47 }
0x139a   :  { %v664_v49 = vpop.f32.mrf.mxu3 }
0x139b   :  { %v665_v50 = vadd.f32 %v710_v48, %v664_v49 }
0x139d   :  { %667 = vst [vmem:[#allocation4] sm:$0xff] %v665_v50 }
0x139e   :  { %678 = dma.vmem_to_hbm [thread:$0]  %s674_s21, 128, %s676_s24, [#allocation5]  }
0x139f   :  { %799 = dma.done.wait [#allocation5], 128  }
0x13a0   :  { %800 = vsyncadd [#allocation5], 4294967168 }
0x13a1   :  { %683 = vsyncpa [#allocation5], 1 }

</bundles_post_ra>
